<compile_context>
chip_gen: v6e
topology: v6e:2x2x1
jax: 0.10.0
libtpu: 0.0.40
codegen_flags: <defaults>
</compile_context>

<pallas_src>
import numpy as np
import jax
import jax.numpy as jnp
from jax.experimental import pallas as pl
from jax.experimental.pallas import tpu as pltpu


_LANES = 128          # vreg lane width
_MAX_ROWS = 8192      # rows per grid step -> 4 MiB f32 per input block
_PAD_LOGIT = -100.0   # padding logit: sigmoid/softplus contributions underflow to ~0


def _round_up(v, m):
    return ((v + m - 1) // m) * m


def _make_kernel(rows_total, rows_per_step, k_per_split, needs_mask):
    """rows_total / rows_per_step / k_per_split are Python ints baked in."""

    def kernel(x_ref, t_ref, out_ref, acc_ref):
        s_idx = pl.program_id(1)
        k = pl.program_id(2)

        @pl.when(k == 0)
        def _():
            acc_ref[...] = jnp.zeros_like(acc_ref)

        def accumulate(mask):
            x = x_ref[...].astype(jnp.float32)      # (rows_per_step, 128)
            t = t_ref[...].astype(jnp.float32)
            # Stable BCE-with-logits: max(x,0) - x*t + log1p(exp(-|x|)).
            e = jnp.exp(-jnp.abs(x))
            bce = jnp.maximum(x, 0.0) - x * t + jnp.log1p(e)
            # sigmoid(x) = 0.5*tanh(x/2) + 0.5: one EUP tanh, no compare /
            # select / reciprocal VALU ops (VALU slot is the bottleneck).
            sig = 0.5 * jnp.tanh(0.5 * x) + 0.5
            inter = sig * t
            if mask is not None:
                bce = jnp.where(mask, bce, 0.0)
                inter = jnp.where(mask, inter, 0.0)
                sig = jnp.where(mask, sig, 0.0)
                t = jnp.where(mask, t, 0.0)

            def fold8(v):
                # (R,128) -> (R//8, 8, 128) vreg view -> sum across vregs (pure VALU).
                return jnp.sum(v.reshape(rows_per_step // 8, 8, _LANES), axis=0)

            # Four full-vreg unmasked accumulator adds; no concat / sublane
            # shuffles / masked sub-vreg stores on the hot path.
            acc_ref[0, :, :] += fold8(bce)
            acc_ref[1, :, :] += fold8(inter)
            acc_ref[2, :, :] += fold8(sig)
            acc_ref[3, :, :] += fold8(t)

        if needs_mask:
            chunk = s_idx * k_per_split + k                 # global chunk index
            valid = rows_total - chunk * rows_per_step      # may be <= 0 or > R

            @pl.when(valid >= rows_per_step)                # full chunk: no mask cost
            def _():
                accumulate(None)

            @pl.when(valid < rows_per_step)                 # ragged tail / phantom chunk
            def _():
                row_ids = jax.lax.broadcasted_iota(
                    jnp.int32, (rows_per_step, _LANES), 0)
                accumulate(row_ids < valid)
        else:
            accumulate(None)

        @pl.when(k == k_per_split - 1)
        def _():
            out_ref[...] = acc_ref[...]     # one unmasked (4,8,128) store per (n,s)

    return kernel


@jax.jit
def bce_dice_loss(logits, target):
    """logits, target: (N, C, H, W) -> scalar loss (float32). Matches BCEDiceLoss."""
    smooth = 1e-05
    N = logits.shape[0]
    D = int(np.prod(logits.shape[1:]))

    # Lane-dense layout: features as (rows, 128).  Pad only to the next
    # (8,128)-tile boundary; if D is already a multiple of 1024 the reshape is
    # free (no padded HBM copy of either tensor).
    rows = _round_up(-(-D // _LANES), 8)
    d_pad = rows * _LANES

    x = logits.reshape(N, D)
    t = target.reshape(N, D)
    if d_pad != D:
        # Padded logits -> sigmoid/softplus underflow to ~0; padded targets = 0.
        x = jnp.pad(x, ((0, 0), (0, d_pad - D)), constant_values=_PAD_LOGIT)
        t = jnp.pad(t, ((0, 0), (0, d_pad - D)), constant_values=0)
    x = x.reshape(N, rows, _LANES)
    t = t.reshape(N, rows, _LANES)

    rows_per_step = min(rows, _MAX_ROWS)
    num_chunks = -(-rows // rows_per_step)

    # Extra parallel split axis keeps both v7x TensorCores busy even for N == 1;
    # it collapses to size 1 when there is only a single chunk per sample.
    num_splits = 2 if num_chunks >= 2 else 1
    k_per_split = -(-num_chunks // num_splits)
    needs_mask = num_splits * k_per_split * rows_per_step != rows

    if num_splits * k_per_split == num_chunks:
        def in_map(n, s, k):
            return (n, s * k_per_split + k, 0)
    else:
        def in_map(n, s, k):
            # Phantom chunks (split tail) re-read the last real block; their
            # contribution is masked to zero inside the kernel.
            return (n, jnp.minimum(s * k_per_split + k, num_chunks - 1), 0)

    kernel = _make_kernel(rows, rows_per_step, k_per_split, needs_mask)

    bytes_in = N * rows * _LANES * (x.dtype.itemsize + t.dtype.itemsize)
    bytes_out = N * num_splits * 4 * 8 * _LANES * 4
    cost = pl.CostEstimate(
        flops=20 * N * rows * _LANES,
        transcendentals=3 * N * rows * _LANES,
        bytes_accessed=bytes_in + bytes_out,
    )

    partials = pl.pallas_call(
        kernel,
        out_shape=jax.ShapeDtypeStruct((N, num_splits, 4, 8, _LANES), jnp.float32),
        grid_spec=pltpu.PrefetchScalarGridSpec(
            num_scalar_prefetch=0,
            grid=(N, num_splits, k_per_split),
            in_specs=[
                pl.BlockSpec((None, rows_per_step, _LANES), in_map),
                pl.BlockSpec((None, rows_per_step, _LANES), in_map),
            ],
            out_specs=pl.BlockSpec(
                (None, None, 4, 8, _LANES), lambda n, s, k: (n, s, 0, 0, 0)),
            scratch_shapes=[pltpu.VMEM((4, 8, _LANES), jnp.float32)],
        ),
        compiler_params=pltpu.CompilerParams(
            dimension_semantics=("parallel", "parallel", "arbitrary"),
            vmem_limit_bytes=40 * 1024 * 1024,
        ),
        cost_estimate=cost,
    )(x, t)

    sums = jnp.sum(partials, axis=(1, 3, 4))   # (N, 4): tiny O(N) glue reduce
    bce_sum, inter_sum, sig_sum, tgt_sum = (sums[:, i] for i in range(4))

    bce = jnp.sum(bce_sum) / float(N * D)      # mean over the true element count
    dice = (2.0 * inter_sum + smooth) / (sig_sum + tgt_sum + smooth)
    dice_loss = 1.0 - jnp.sum(dice) / N
    return 0.5 * bce + dice_loss


def _reference_loss(logits, target):
    # pure-JAX reference for a correctness check
    x = logits.astype(jnp.float32)
    t = target.astype(jnp.float32)
    bce = jnp.mean(jnp.maximum(x, 0.0) - x * t + jnp.log1p(jnp.exp(-jnp.abs(x))))
    smooth = 1e-05
    s = jax.nn.sigmoid(x)
    N = x.shape[0]
    s = s.reshape(N, -1)
    t = t.reshape(N, -1)
    dice = (2.0 * (s * t).sum(1) + smooth) / (s.sum(1) + t.sum(1) + smooth)
    return 0.5 * bce + (1.0 - dice.sum() / N)


if __name__ == "__main__":
    key = jax.random.PRNGKey(0)
    k1, k2 = jax.random.split(key)

    N, C, H, W = 2, 4, 16, 16
    logits = jax.random.normal(k1, (N, C, H, W), dtype=jnp.float32)
    # 0/1 mask kept in bf16 (exact for 0/1 values) to halve its HBM traffic;
    # soft (non-binary) targets should stay f32 at the call site.
    target = (jax.random.uniform(k2, (N, C, H, W)) > 0.5).astype(jnp.bfloat16)

    loss = jax.block_until_ready(bce_dice_loss(logits, target))
    ref = jax.block_until_ready(_reference_loss(logits, target))
    # tanh-based sigmoid (EUP) can shift results by ~1e-4 relative vs exact sigmoid.
    assert np.allclose(np.asarray(loss), np.asarray(ref), rtol=1e-3, atol=1e-3), (
        float(loss), float(ref))

    print("KERNEL_OK")
</pallas_src>

<mosaic_0001>
module attributes {stable_mosaic.version = 11 : i64} {
  func.func @kernel(%arg0: i32, %arg1: i32, %arg2: i32, %arg3: memref<1x8x128xf32, #tpu.memory_space<vmem>>, %arg4: memref<1x8x128xbf16, #tpu.memory_space<vmem>>, %arg5: memref<1x1x4x8x128xf32, #tpu.memory_space<vmem>>, %arg6: memref<4x8x128xf32, #tpu.memory_space<vmem>>) attributes {dimension_semantics = [#tpu.dimension_semantics<parallel>, #tpu.dimension_semantics<parallel>, #tpu.dimension_semantics<arbitrary>], iteration_bounds = array<i64: 2, 1, 1>, scalar_prefetch = 0 : i64, scratch_operands = 1 : i64, tpu.core_type = #tpu.core_type<tc>, window_params = [{transform_indices = @transform_0, window_bounds = array<i64: 1, 8, 128>}, {transform_indices = @transform_1, window_bounds = array<i64: 1, 8, 128>}, {transform_indices = @transform_2, window_bounds = array<i64: 1, 1, 4, 8, 128>}]} {
    %c0_i32 = arith.constant 0 : i32
    %0 = arith.cmpi eq, %arg2, %c0_i32 : i32
    %1 = arith.extui %0 : i1 to i32
    %c0_i32_0 = arith.constant 0 : i32
    %2 = arith.cmpi ne, %1, %c0_i32_0 : i32
    scf.if %2 {
      %cst_37 = arith.constant 0.000000e+00 : f32
      %61 = vector.broadcast %cst_37 : f32 to vector<4x8x128xf32>
      %c0_38 = arith.constant 0 : index
      %c0_39 = arith.constant 0 : index
      %c0_40 = arith.constant 0 : index
      %62 = vector.load %arg6[%c0_38, %c0_39, %c0_40] : memref<4x8x128xf32, #tpu.memory_space<vmem>>, vector<4x8x128xf32>
      tpu.vector_store %arg6[%c0_38, %c0_39, %c0_40], %61 {strides = array<i32>} : memref<4x8x128xf32, #tpu.memory_space<vmem>>, vector<4x8x128xf32>,
    } else {
    }
    %c0 = arith.constant 0 : index
    %c0_1 = arith.constant 0 : index
    %c0_2 = arith.constant 0 : index
    %3 = vector.load %arg3[%c0, %c0_1, %c0_2] : memref<1x8x128xf32, #tpu.memory_space<vmem>>, vector<1x8x128xf32>
    %4 = vector.shape_cast %3 : vector<1x8x128xf32> to vector<8x128xf32>
    %c0_3 = arith.constant 0 : index
    %c0_4 = arith.constant 0 : index
    %c0_5 = arith.constant 0 : index
    %5 = vector.load %arg4[%c0_3, %c0_4, %c0_5] : memref<1x8x128xbf16, #tpu.memory_space<vmem>>, vector<1x8x128xbf16>
    %6 = vector.shape_cast %5 : vector<1x8x128xbf16> to vector<8x128xbf16>
    %7 = arith.extf %6 : vector<8x128xbf16> to vector<8x128xf32>
    %8 = math.absf %4 : vector<8x128xf32>
    %cst = arith.constant 0.000000e+00 : f32
    %9 = vector.broadcast %cst : f32 to vector<8x128xf32>
    %10 = arith.subf %9, %8 : vector<8x128xf32>
    %11 = math.exp %10 : vector<8x128xf32>
    %cst_6 = arith.constant 0.000000e+00 : f32
    %12 = vector.broadcast %cst_6 : f32 to vector<8x128xf32>
    %13 = arith.maximumf %4, %12 : vector<8x128xf32>
    %14 = arith.mulf %4, %7 : vector<8x128xf32>
    %15 = arith.subf %13, %14 : vector<8x128xf32>
    %16 = math.log1p %11 : vector<8x128xf32>
    %17 = arith.addf %15, %16 : vector<8x128xf32>
    %cst_7 = arith.constant 5.000000e-01 : f32
    %18 = vector.broadcast %cst_7 : f32 to vector<8x128xf32>
    %19 = arith.mulf %18, %4 : vector<8x128xf32>
    %20 = math.tanh %19 : vector<8x128xf32>
    %cst_8 = arith.constant 5.000000e-01 : f32
    %21 = vector.broadcast %cst_8 : f32 to vector<8x128xf32>
    %22 = arith.mulf %21, %20 : vector<8x128xf32>
    %cst_9 = arith.constant 5.000000e-01 : f32
    %23 = vector.broadcast %cst_9 : f32 to vector<8x128xf32>
    %24 = arith.addf %22, %23 : vector<8x128xf32>
    %25 = arith.mulf %24, %7 : vector<8x128xf32>
    %c0_10 = arith.constant 0 : index
    %c0_11 = arith.constant 0 : index
    %c0_12 = arith.constant 0 : index
    %26 = vector.load %arg6[%c0_10, %c0_11, %c0_12] : memref<4x8x128xf32, #tpu.memory_space<vmem>>, vector<1x8x128xf32>
    %27 = vector.shape_cast %26 : vector<1x8x128xf32> to vector<8x128xf32>
    %28 = vector.shape_cast %17 : vector<8x128xf32> to vector<1x8x128xf32>
    %cst_13 = arith.constant dense<0.000000e+00> : vector<8x128xf32>
    %29 = vector.multi_reduction <add>, %28, %cst_13 [0] : vector<1x8x128xf32> to vector<8x128xf32>
    %30 = arith.addf %27, %29 : vector<8x128xf32>
    %c0_14 = arith.constant 0 : index
    %c0_15 = arith.constant 0 : index
    %c0_16 = arith.constant 0 : index
    %31 = vector.load %arg6[%c0_14, %c0_15, %c0_16] : memref<4x8x128xf32, #tpu.memory_space<vmem>>, vector<1x8x128xf32>
    %32 = vector.shape_cast %31 : vector<1x8x128xf32> to vector<8x128xf32>
    %33 = vector.shape_cast %30 : vector<8x128xf32> to vector<1x8x128xf32>
    tpu.vector_store %arg6[%c0_14, %c0_15, %c0_16], %33 {strides = array<i32>} : memref<4x8x128xf32, #tpu.memory_space<vmem>>, vector<1x8x128xf32>,
    %c1 = arith.constant 1 : index
    %c0_17 = arith.constant 0 : index
    %c0_18 = arith.constant 0 : index
    %34 = vector.load %arg6[%c1, %c0_17, %c0_18] : memref<4x8x128xf32, #tpu.memory_space<vmem>>, vector<1x8x128xf32>
    %35 = vector.shape_cast %34 : vector<1x8x128xf32> to vector<8x128xf32>
    %36 = vector.shape_cast %25 : vector<8x128xf32> to vector<1x8x128xf32>
    %cst_19 = arith.constant dense<0.000000e+00> : vector<8x128xf32>
    %37 = vector.multi_reduction <add>, %36, %cst_19 [0] : vector<1x8x128xf32> to vector<8x128xf32>
    %38 = arith.addf %35, %37 : vector<8x128xf32>
    %c1_20 = arith.constant 1 : index
    %c0_21 = arith.constant 0 : index
    %c0_22 = arith.constant 0 : index
    %39 = vector.load %arg6[%c1_20, %c0_21, %c0_22] : memref<4x8x128xf32, #tpu.memory_space<vmem>>, vector<1x8x128xf32>
    %40 = vector.shape_cast %39 : vector<1x8x128xf32> to vector<8x128xf32>
    %41 = vector.shape_cast %38 : vector<8x128xf32> to vector<1x8x128xf32>
    tpu.vector_store %arg6[%c1_20, %c0_21, %c0_22], %41 {strides = array<i32>} : memref<4x8x128xf32, #tpu.memory_space<vmem>>, vector<1x8x128xf32>,
    %c2 = arith.constant 2 : index
    %c0_23 = arith.constant 0 : index
    %c0_24 = arith.constant 0 : index
    %42 = vector.load %arg6[%c2, %c0_23, %c0_24] : memref<4x8x128xf32, #tpu.memory_space<vmem>>, vector<1x8x128xf32>
    %43 = vector.shape_cast %42 : vector<1x8x128xf32> to vector<8x128xf32>
    %44 = vector.shape_cast %24 : vector<8x128xf32> to vector<1x8x128xf32>
    %cst_25 = arith.constant dense<0.000000e+00> : vector<8x128xf32>
    %45 = vector.multi_reduction <add>, %44, %cst_25 [0] : vector<1x8x128xf32> to vector<8x128xf32>
    %46 = arith.addf %43, %45 : vector<8x128xf32>
    %c2_26 = arith.constant 2 : index
    %c0_27 = arith.constant 0 : index
    %c0_28 = arith.constant 0 : index
    %47 = vector.load %arg6[%c2_26, %c0_27, %c0_28] : memref<4x8x128xf32, #tpu.memory_space<vmem>>, vector<1x8x128xf32>
    %48 = vector.shape_cast %47 : vector<1x8x128xf32> to vector<8x128xf32>
    %49 = vector.shape_cast %46 : vector<8x128xf32> to vector<1x8x128xf32>
    tpu.vector_store %arg6[%c2_26, %c0_27, %c0_28], %49 {strides = array<i32>} : memref<4x8x128xf32, #tpu.memory_space<vmem>>, vector<1x8x128xf32>,
    %c3 = arith.constant 3 : index
    %c0_29 = arith.constant 0 : index
    %c0_30 = arith.constant 0 : index
    %50 = vector.load %arg6[%c3, %c0_29, %c0_30] : memref<4x8x128xf32, #tpu.memory_space<vmem>>, vector<1x8x128xf32>
    %51 = vector.shape_cast %50 : vector<1x8x128xf32> to vector<8x128xf32>
    %52 = vector.shape_cast %7 : vector<8x128xf32> to vector<1x8x128xf32>
    %cst_31 = arith.constant dense<0.000000e+00> : vector<8x128xf32>
    %53 = vector.multi_reduction <add>, %52, %cst_31 [0] : vector<1x8x128xf32> to vector<8x128xf32>
    %54 = arith.addf %51, %53 : vector<8x128xf32>
    %c3_32 = arith.constant 3 : index
    %c0_33 = arith.constant 0 : index
    %c0_34 = arith.constant 0 : index
    %55 = vector.load %arg6[%c3_32, %c0_33, %c0_34] : memref<4x8x128xf32, #tpu.memory_space<vmem>>, vector<1x8x128xf32>
    %56 = vector.shape_cast %55 : vector<1x8x128xf32> to vector<8x128xf32>
    %57 = vector.shape_cast %54 : vector<8x128xf32> to vector<1x8x128xf32>
    tpu.vector_store %arg6[%c3_32, %c0_33, %c0_34], %57 {strides = array<i32>} : memref<4x8x128xf32, #tpu.memory_space<vmem>>, vector<1x8x128xf32>,
    %c0_i32_35 = arith.constant 0 : i32
    %58 = arith.cmpi eq, %arg2, %c0_i32_35 : i32
    %59 = arith.extui %58 : i1 to i32
    %c0_i32_36 = arith.constant 0 : i32
    %60 = arith.cmpi ne, %59, %c0_i32_36 : i32
    scf.if %60 {
      %c0_37 = arith.constant 0 : index
      %c0_38 = arith.constant 0 : index
      %c0_39 = arith.constant 0 : index
      %61 = vector.load %arg6[%c0_37, %c0_38, %c0_39] : memref<4x8x128xf32, #tpu.memory_space<vmem>>, vector<4x8x128xf32>
      %c0_40 = arith.constant 0 : index
      %c0_41 = arith.constant 0 : index
      %c0_42 = arith.constant 0 : index
      %c0_43 = arith.constant 0 : index
      %c0_44 = arith.constant 0 : index
      %62 = vector.load %arg5[%c0_40, %c0_41, %c0_42, %c0_43, %c0_44] : memref<1x1x4x8x128xf32, #tpu.memory_space<vmem>>, vector<1x1x4x8x128xf32>
      %63 = vector.shape_cast %62 : vector<1x1x4x8x128xf32> to vector<4x8x128xf32>
      %64 = vector.shape_cast %61 : vector<4x8x128xf32> to vector<1x1x4x8x128xf32>
      tpu.vector_store %arg5[%c0_40, %c0_41, %c0_42, %c0_43, %c0_44], %64 {strides = array<i32>} : memref<1x1x4x8x128xf32, #tpu.memory_space<vmem>>, vector<1x1x4x8x128xf32>,
    } else {
    }
    return
  }
  func.func @transform_0(%arg0: i32, %arg1: i32, %arg2: i32) -> (i32, i32, i32) {
    %c1_i32 = arith.constant 1 : i32
    %0 = arith.muli %arg1, %c1_i32 : i32
    %1 = arith.addi %0, %arg2 : i32
    %c0_i32 = arith.constant 0 : i32
    %c0_i32_0 = arith.constant 0 : i32
    return %arg0, %1, %c0_i32 : i32, i32, i32
  }
  func.func @transform_1(%arg0: i32, %arg1: i32, %arg2: i32) -> (i32, i32, i32) {
    %c1_i32 = arith.constant 1 : i32
    %0 = arith.muli %arg1, %c1_i32 : i32
    %1 = arith.addi %0, %arg2 : i32
    %c0_i32 = arith.constant 0 : i32
    %c0_i32_0 = arith.constant 0 : i32
    return %arg0, %1, %c0_i32 : i32, i32, i32
  }
  func.func @transform_2(%arg0: i32, %arg1: i32, %arg2: i32) -> (i32, i32, i32, i32, i32) {
    %c0_i32 = arith.constant 0 : i32
    %c0_i32_0 = arith.constant 0 : i32
    %c0_i32_1 = arith.constant 0 : i32
    %c0_i32_2 = arith.constant 0 : i32
    return %arg0, %arg1, %c0_i32, %c0_i32_0, %c0_i32_1 : i32, i32, i32, i32, i32
  }
}

</mosaic_0001>

<bundles_post_ra>
// kernel: bce_dice_loss.1
= control target key start
LH: loop header
LB: loop body
LE: loop exit
PB: predicated region body
PF: predicated region fallthrough
CT: control target
= control target key end

     0   :  { %s471_s9 = smov 0   ;;  %s473_s10 = smov 0   ;;  %s507_s0 = inlined_call_operand.vmem [shape: f32[2,8,128], index: 0, kind: input, shape index: {}]   ;;  %s508_s1 = inlined_call_operand.vmem [shape: bf16[2,8,128], index: 1, kind: input, shape index: {}]   ;;  %s509_s2 = inlined_call_operand.vmem [shape: f32[2,1,4,8,128], index: 2, kind: output, shape index: {}]  }
   0x1   :  { %s475_s11 = smov 0  }
   0x2 LB: > { %s31_s12 = sadd.s32 1, %s450_s10  ;;  %p394_p0 = scmp.ge.s32.totalorder %s454_s11, 1  ;;  %s454_s11 = sphi %s475_s11, %s12_s11   ;;  %s450_s10 = sphi %s473_s10, %s511_s10   ;;  %s446_s9 = sphi %s471_s9, %s510_s9  }
   0x3   : > { %p33_p1 = scmp.ge.s32.totalorder %s31_s12, 2  ;;  %p159_p2 = scmp.lt.s32.totalorder %s454_s11, 3 }
   0x5   : > { %s513_s12 = smov (%p33_p1, %s31_s12), 0  ;;  %p160_p3 = pnand %p394_p0, %p159_p2 }
   0x6   : > { %p197_p4 = scmp.lt.s32.totalorder (!%p160_p3), %s446_s9, 1 }
   0x7   : > { %163 = sbr.rel (%p160_p3) target bundleno = 58 (0x3a), region = 28 }
   0xc   : > { %s515_s9 = smov (!%p197_p4, %s446_s9), 1 }
   0xd   : > { %s395_s13 = sshll.u32 %s515_s9, 3  ;;  %s396_s14 = sshll.u32 %s515_s9, 2 }
   0xe   : > { %s203_s17 = scalar_lea.vmem %s507_s0, %s395_s13  ;;  %s212_s20 = scalar_lea.vmem %s508_s1, %s396_s14 }
   0xf   : > { %s401_s21 = sshll.u32 %s515_s9, 5  ;;  %v231_v0 = vld [vmem:[%s203_s17] sm:$0xff] }
  0x10   : > { %v232_v1 = vld [vmem:[%s212_s20] sm:$0xf]  ;;  %s222_s24 = scalar_lea.vmem %s509_s2, %s401_s21  ;;  %v234_v3 = vand.u32 2147483647, %v231_v0  ;;  %v251_v4 = vmul.f32 0.5, %v231_v0  ;;  %v238_v15 = vmax.f32 %v231_v0, 0.0 }
  0x11   : > { %v233_v2 = vunpack.c.l.bf16 %v232_v1 }
  0x12   : > { %v235_v5 = vsub.f32 0.0, %v234_v3  ;;  %426 = vtanh.f32 %v251_v4 }
  0x13   : > { %285 = vst [vmem:[%s222_s24 + $0x18] sm:$0xff] %v233_v2  ;;  %v239_v16 = vmul.f32 %v233_v2, %v231_v0 }
  0x14   : > { %v236_v6 = vmul.f32 1.442695, %v235_v5 }
  0x15   : > { %v240_v20 = vsub.f32 %v238_v15, %v239_v16 }
  0x16   : > { %428 = vpow2.f32 %v236_v6 }
  0x1f   : > { %v427_v7 = vpop.eup %426 }
  0x20   : > { %v253_v8 = vmul.f32 0.5, %v427_v7 }
  0x22   : > { %v254_v9 = vadd.f32 0.5, %v253_v8 }
  0x23   : > { %v429_v10 = vpop.eup %428 }
  0x24   : > { %v241_v11 = vadd.f32 1.0, %v429_v10  ;;  %v255_v12 = vmul.f32 %v254_v9, %v233_v2  ;;  %284 = vst [vmem:[%s222_s24 + $0x10] sm:$0xff] %v254_v9  ;;  %v244_v13 = vmul.f32 -0.5, %v429_v10  ;;  %v247_v17 = vand.u32 2147483647, %v429_v10 }
  0x26   : > { %430 = vlog2.f32 %v241_v11  ;;  %283 = vst [vmem:[%s222_s24 + $0x8] sm:$0xff] %v255_v12  ;;  %v245_v14 = vadd.f32 1.0, %v244_v13  ;;  %vm248_vm0 = vcmp.lt.f32.partialorder %v247_v17, 0.0004427343 }
  0x28   : > { %v246_v18 = vmul.f32 %v429_v10, %v245_v14 }
  0x33   : > { %v431_v19 = vpop.eup %430 }
  0x34   : > { %v243_v21 = vmul.f32 0.6931472, %v431_v19 }
  0x36   : > { %v249_v22 = vsel %vm248_vm0, %v246_v18, %v243_v21 }
  0x37   : > { %v250_v23 = vadd.f32 %v249_v22, %v240_v20 }
  0x39   : > { %282 = vst [vmem:[%s222_s24] sm:$0xff] %v250_v23 }
  0x3a PF: > { %s12_s11 = sadd.s32 1, %s454_s11   ;;  %s510_s9 = smov %s450_s10 }
  0x3b   : > { %p9_p5 = scmp.ge.s32.totalorder %s12_s11, 4   ;;  %s511_s10 = smov %s513_s12 }
  0x3d   :  { %11 = sbr.rel (!%p9_p5) target bundleno = 2 (0x2), region = 72 }

</bundles_post_ra>
